<compile_context>
chip_gen: v7x
topology: tpu7x:2x2x1
jax: 0.10.0
libtpu: 0.0.40
codegen_flags: <defaults>
</compile_context>

<pallas_src>
import functools

import jax
import jax.numpy as jnp
import numpy as np
from jax import lax
from jax.experimental import pallas as pl
from jax.experimental.pallas import tpu as pltpu


def _modulo_kernel(x_ref, o_ref, *, modulo: int, use_fast_mod: bool):
    """Elementwise Python-style remainder (sign of divisor) on the VPU."""
    x = x_ref[...]

    if not use_fast_mod:
        o_ref[...] = jnp.remainder(x, jnp.int32(modulo))
        return

    if modulo & (modulo - 1) == 0:
        # Power of two: two's-complement AND is exact Python modulo,
        # including for negative ids.
        o_ref[...] = x & jnp.int32(modulo - 1)
        return

    # Constant-divisor magic multiplier (Granlund-Montgomery / libdivide).
    # With s = ceil(log2(d)) and M = ceil(2^(32+s)/d), M*d <= 2^(32+s) + 2^s,
    # hence floor(u*M / 2^(32+s)) == floor(u/d) for all u in [0, 2^32).
    # M is a 33-bit constant: M = 2^32 + M'.  Then
    #   q    = mulhi32(u, M')
    #   quot = (((u - q) >> 1) + q) >> (s - 1)   (== floor(u/d), no overflow)
    s = (modulo - 1).bit_length()
    big_m = ((1 << (32 + s)) + modulo - 1) // modulo  # ceil(2^(32+s)/modulo)
    mp = big_m - (1 << 32)
    assert 0 < mp < (1 << 32)
    m_lo = jnp.uint32(mp & 0xFFFF)
    m_hi = jnp.uint32(mp >> 16)
    mask16 = jnp.uint32(0xFFFF)

    neg = x < 0
    # |x| as unsigned.  -INT_MIN wraps back to INT_MIN whose bit pattern,
    # reinterpreted as uint32, is exactly 2^31 = |INT_MIN|.
    u = pltpu.bitcast(jnp.where(neg, -x, x), jnp.uint32)

    # 32x32 -> high-32 unsigned multiply built from 16-bit partial products
    # (pure VPU adds/multiplies/shifts; no integer divide anywhere).
    a_lo = u & mask16
    a_hi = u >> 16
    ll = a_lo * m_lo
    lh = a_lo * m_hi
    hl = a_hi * m_lo
    hh = a_hi * m_hi
    cross = (ll >> 16) + (lh & mask16) + (hl & mask16)
    q = hh + (lh >> 16) + (hl >> 16) + (cross >> 16)

    t = ((u - q) >> 1) + q            # floor((u + q) / 2), stays in 32 bits
    quot = t >> (s - 1)               # == floor(u / modulo)
    rem_u = u - quot * jnp.uint32(modulo)
    rem = pltpu.bitcast(rem_u, jnp.int32)   # rem in [0, modulo) < 2^31

    # Python/torch remainder for negative x: modulo - (|x| mod modulo), else 0.
    o_ref[...] = jnp.where(neg & (rem > 0), jnp.int32(modulo) - rem, rem)


def _round_up(n: int, m: int) -> int:
    return ((n + m - 1) // m) * m


def modulo_map_id_list(raw_values: jax.Array, modulo: int, *,
                       block_rows: int = 512, width: int = 1024,
                       min_pallas_elems: int = 4096,
                       use_fast_mod: bool = True) -> jax.Array:
    """Pallas implementation of ModuloMapIDList.forward.

    raw_values: integer array of sparse ids (any shape, any length).
    Returns an int32 array of the same shape with values in [0, modulo).
    """
    modulo = int(modulo)
    assert 1 <= modulo < 2 ** 31, "modulo must be a positive int32 value"
    assert width % 128 == 0, "lane dimension must be a multiple of 128"

    orig_shape = raw_values.shape
    # TODO(synk): torch computes in int64; int32 assumed sufficient for ids.
    x = jnp.asarray(raw_values).astype(jnp.int32).reshape(-1)
    n = x.shape[0]

    if n == 0:
        return jnp.zeros(orig_shape, jnp.int32)

    if n < min_pallas_elems:
        # Kernel-launch + pipeline-prologue cost dwarfs the work: plain XLA op.
        return jnp.remainder(x, jnp.int32(modulo)).reshape(orig_shape)

    # Lane-dense layout: flat ids -> (rows, width).  Wide last dim => long
    # unmasked vector stores and big contiguous DMAs; big row blocks amortize
    # the ~0.35 us/grid-step pipeline overhead.
    n_rows = -(-n // width)
    eff_rows = min(_round_up(block_rows, 8), _round_up(n_rows, 8))
    n_rows_pad = _round_up(n_rows, eff_rows)
    n_pad = n_rows_pad * width
    if n_pad != n:
        x = jnp.concatenate([x, jnp.zeros((n_pad - n,), jnp.int32)])
    x2d = x.reshape(n_rows_pad, width)

    kernel = functools.partial(_modulo_kernel, modulo=modulo,
                               use_fast_mod=use_fast_mod)
    out = pl.pallas_call(
        kernel,
        out_shape=jax.ShapeDtypeStruct((n_rows_pad, width), jnp.int32),
        grid_spec=pl.GridSpec(
            grid=(n_rows_pad // eff_rows,),
            in_specs=[pl.BlockSpec((eff_rows, width), lambda i: (i, 0))],
            out_specs=pl.BlockSpec((eff_rows, width), lambda i: (i, 0)),
        ),
        compiler_params=pltpu.CompilerParams(
            dimension_semantics=("parallel",)),  # v7x: shard over both TCs
    )(x2d)

    return out.reshape(-1)[:n].reshape(orig_shape)


if __name__ == "__main__":
    k0, k1 = jax.random.split(jax.random.PRNGKey(0))

    int_min = -(2 ** 31)
    int_max = 2 ** 31 - 1

    # ~70k sparse ids spanning the full int32 range.
    n = 70_000
    bits = jax.random.bits(k0, (n,), dtype=jnp.uint32)
    base = lax.bitcast_convert_type(bits, jnp.int32)

    def run_checks(modulo, raw, **kw):
        out = jax.block_until_ready(modulo_map_id_list(raw, modulo, **kw))
        ref = np.remainder(np.asarray(raw, dtype=np.int64), modulo).astype(np.int32)
        assert out.dtype == jnp.int32
        assert out.shape == raw.shape
        np.testing.assert_array_equal(np.asarray(out), ref)
        out_np = np.asarray(out)
        assert int(out_np.min()) >= 0 and int(out_np.max()) < max(modulo, 1)

    # Kernel path: multiple grid steps (64x256 tiles), fast-modulo variants,
    # explicit edge cases (0, +-1, INT_MIN/MAX, multiples of modulo).
    for modulo in (7, 1000, 1024, 2 ** 31 - 1):
        edges = jnp.array(
            [0, 1, -1, int_max, int_min, modulo - 1, -(modulo - 1),
             min(modulo, int_max), -min(modulo, int_max)], dtype=jnp.int32)
        raw = jnp.concatenate([base, edges])
        run_checks(modulo, raw, block_rows=64, width=256, min_pallas_elems=1024)

    # Default large-tile config and the jnp.remainder fallback path.
    raw = jnp.concatenate(
        [base, jnp.array([0, -1, int_min, int_max], dtype=jnp.int32)])
    run_checks(1000, raw)  # defaults: big lane-dense tile, single/few steps
    run_checks(1000, raw, use_fast_mod=False,
               block_rows=64, width=256, min_pallas_elems=1024)

    # Tiny inputs take the jnp.remainder bypass (no pallas_call), incl. 2-D.
    small = jax.random.randint(k1, (16, 128), minval=-100_000, maxval=100_000,
                               dtype=jnp.int32)
    run_checks(1000, small)
    run_checks(13, small.reshape(-1)[:1000])

    print("KERNEL_OK")
</pallas_src>

<mosaic_0001>
module attributes {stable_mosaic.version = 11 : i64} {
  func.func @_modulo_kernel(%arg0: i32, %arg1: memref<64x256xi32, #tpu.memory_space<vmem>>, %arg2: memref<64x256xi32, #tpu.memory_space<vmem>>) attributes {dimension_semantics = [#tpu.dimension_semantics<parallel>], iteration_bounds = array<i64: 5>, scalar_prefetch = 0 : i64, scratch_operands = 0 : i64, tpu.core_type = #tpu.core_type<tc>, window_params = [{transform_indices = @transform_0, window_bounds = array<i64: 64, 256>}, {transform_indices = @transform_1, window_bounds = array<i64: 64, 256>}]} {
    %c0 = arith.constant 0 : index
    %c0_0 = arith.constant 0 : index
    %0 = vector.load %arg1[%c0, %c0_0] : memref<64x256xi32, #tpu.memory_space<vmem>>, vector<64x256xi32>
    %c0_i32 = arith.constant 0 : i32
    %1 = vector.broadcast %c0_i32 : i32 to vector<64x256xi32>
    %2 = arith.cmpi slt, %0, %1 : vector<64x256xi32>
    %c0_i32_1 = arith.constant 0 : i32
    %3 = vector.broadcast %c0_i32_1 : i32 to vector<64x256xi32>
    %4 = arith.subi %3, %0 : vector<64x256xi32>
    %5 = arith.select %2, %4, %0 : vector<64x256xi1>, vector<64x256xi32>
    %6 = tpu.bitcast %5 : vector<64x256xi32> -> vector<64x256xi32>
    %c65535_i32 = arith.constant 65535 : i32
    %7 = vector.broadcast %c65535_i32 : i32 to vector<64x256xi32>
    %8 = arith.andi %6, %7 : vector<64x256xi32>
    %c16_i32 = arith.constant 16 : i32
    %9 = vector.broadcast %c16_i32 : i32 to vector<64x256xi32>
    %10 = arith.shrui %6, %9 : vector<64x256xi32>
    %c18725_i32 = arith.constant 18725 : i32
    %11 = vector.broadcast %c18725_i32 : i32 to vector<64x256xi32>
    %12 = arith.muli %8, %11 : vector<64x256xi32>
    %c9362_i32 = arith.constant 9362 : i32
    %13 = vector.broadcast %c9362_i32 : i32 to vector<64x256xi32>
    %14 = arith.muli %8, %13 : vector<64x256xi32>
    %c18725_i32_2 = arith.constant 18725 : i32
    %15 = vector.broadcast %c18725_i32_2 : i32 to vector<64x256xi32>
    %16 = arith.muli %10, %15 : vector<64x256xi32>
    %c9362_i32_3 = arith.constant 9362 : i32
    %17 = vector.broadcast %c9362_i32_3 : i32 to vector<64x256xi32>
    %18 = arith.muli %10, %17 : vector<64x256xi32>
    %c16_i32_4 = arith.constant 16 : i32
    %19 = vector.broadcast %c16_i32_4 : i32 to vector<64x256xi32>
    %20 = arith.shrui %12, %19 : vector<64x256xi32>
    %c65535_i32_5 = arith.constant 65535 : i32
    %21 = vector.broadcast %c65535_i32_5 : i32 to vector<64x256xi32>
    %22 = arith.andi %14, %21 : vector<64x256xi32>
    %23 = arith.addi %20, %22 : vector<64x256xi32>
    %c65535_i32_6 = arith.constant 65535 : i32
    %24 = vector.broadcast %c65535_i32_6 : i32 to vector<64x256xi32>
    %25 = arith.andi %16, %24 : vector<64x256xi32>
    %26 = arith.addi %23, %25 : vector<64x256xi32>
    %c16_i32_7 = arith.constant 16 : i32
    %27 = vector.broadcast %c16_i32_7 : i32 to vector<64x256xi32>
    %28 = arith.shrui %14, %27 : vector<64x256xi32>
    %29 = arith.addi %18, %28 : vector<64x256xi32>
    %c16_i32_8 = arith.constant 16 : i32
    %30 = vector.broadcast %c16_i32_8 : i32 to vector<64x256xi32>
    %31 = arith.shrui %16, %30 : vector<64x256xi32>
    %32 = arith.addi %29, %31 : vector<64x256xi32>
    %c16_i32_9 = arith.constant 16 : i32
    %33 = vector.broadcast %c16_i32_9 : i32 to vector<64x256xi32>
    %34 = arith.shrui %26, %33 : vector<64x256xi32>
    %35 = arith.addi %32, %34 : vector<64x256xi32>
    %36 = arith.subi %6, %35 : vector<64x256xi32>
    %c1_i32 = arith.constant 1 : i32
    %37 = vector.broadcast %c1_i32 : i32 to vector<64x256xi32>
    %38 = arith.shrui %36, %37 : vector<64x256xi32>
    %39 = arith.addi %38, %35 : vector<64x256xi32>
    %c2_i32 = arith.constant 2 : i32
    %40 = vector.broadcast %c2_i32 : i32 to vector<64x256xi32>
    %41 = arith.shrui %39, %40 : vector<64x256xi32>
    %c7_i32 = arith.constant 7 : i32
    %42 = vector.broadcast %c7_i32 : i32 to vector<64x256xi32>
    %43 = arith.muli %41, %42 : vector<64x256xi32>
    %44 = arith.subi %6, %43 : vector<64x256xi32>
    %45 = tpu.bitcast %44 : vector<64x256xi32> -> vector<64x256xi32>
    %c0_i32_10 = arith.constant 0 : i32
    %46 = vector.broadcast %c0_i32_10 : i32 to vector<64x256xi32>
    %47 = arith.cmpi sgt, %45, %46 : vector<64x256xi32>
    %48 = arith.andi %2, %47 : vector<64x256xi1>
    %c7_i32_11 = arith.constant 7 : i32
    %49 = vector.broadcast %c7_i32_11 : i32 to vector<64x256xi32>
    %50 = arith.subi %49, %45 : vector<64x256xi32>
    %51 = arith.select %48, %50, %45 : vector<64x256xi1>, vector<64x256xi32>
    %c0_12 = arith.constant 0 : index
    %c0_13 = arith.constant 0 : index
    %52 = vector.load %arg2[%c0_12, %c0_13] : memref<64x256xi32, #tpu.memory_space<vmem>>, vector<64x256xi32>
    tpu.vector_store %arg2[%c0_12, %c0_13], %51 {strides = array<i32>} : memref<64x256xi32, #tpu.memory_space<vmem>>, vector<64x256xi32>,
    return
  }
  func.func @transform_0(%arg0: i32) -> (i32, i32) {
    %c0_i32 = arith.constant 0 : i32
    %c0_i32_0 = arith.constant 0 : i32
    return %arg0, %c0_i32 : i32, i32
  }
  func.func @transform_1(%arg0: i32) -> (i32, i32) {
    %c0_i32 = arith.constant 0 : i32
    %c0_i32_0 = arith.constant 0 : i32
    return %arg0, %c0_i32 : i32, i32
  }
}

</mosaic_0001>

<bundles_post_ra>
// kernel: tpu_custom_call.1
= control target key start
LH: loop header
LB: loop body
LE: loop exit
PB: predicated region body
PF: predicated region fallthrough
CT: control target
= control target key end

     0   :  { %6 = vsyncpa [#allocation3], 0  ;;  %s1343_s0 = inlined_call_operand.hbm [shape: s32[320,256], index: 0, kind: input, shape index: {}]   ;;  %s1344_s1 = inlined_call_operand.hbm [shape: s32[320,256], index: 1, kind: output, shape index: {}]  }
   0x1   :  { %8 = vsyncpa [#allocation3 + $0x1], 0 }
   0x2   :  { %9 = vsyncpa [#allocation4], 0 }
   0x3   :  { %11 = vsyncpa [#allocation4 + $0x1], 0  ;;  %s938_s6 = smov 0   ;;  %s940_s7 = smov 0  }
   0x4   :  { %s942_s8 = smov 0   ;;  %s944_s9 = smov 0  }
   0x5 LB: > { %s959_s10 = sadd.s32 4294967295, %s920_s9   ;;  %s738_s11 = sadd.s32 4294967294, %s920_s9   ;;  %s920_s9 = sphi %s944_s9, %s1356_s9   ;;  %s916_s8 = sphi %s942_s8, %s1355_s8   ;;  %s912_s7 = sphi %s940_s7, %s1354_s7   ;;  %s908_s6 = sphi %s938_s6, %s1353_s6  }
   0x6   : > { %s963_s12 = sadd.s32 1, %s920_s9   ;;  %s24_s13 = sadd.s32 1, %s916_s8 }
   0x7   : > { %s21_s14 = ssub.s32 %s920_s9, %s963_s12  ;;  %p31_p0 = scmp.ne.s32.totalorder %s916_s8, %s912_s7 }
   0x8   : > { %p22_p1 = scmp.eq.s32.totalorder %s21_s14, 0  ;;  %p32_p2 = scmp.eq.s32.totalorder %s920_s9, 0 }
   0x9   : > { %p37_p3 = scmp.ne.s32.totalorder %s912_s7, %s908_s6  ;;  %p38_p4 = scmp.eq.s32.totalorder %s959_s10, 0 }
   0xa   : > { %s975_s15 = scalar_select %p22_p1, %s916_s8, %s24_s13  }
   0xb   : > { %p977_p5 = por %p32_p2, %p31_p0  ;;  %p981_p6 = por %p38_p4, %p37_p3 }
   0xc   : > { %p61_p7 = scmp.eq.s32.totalorder %s959_s10, 4  ;;  %p67_p8 = scmp.eq.s32.totalorder %s738_s11, 4 }
   0xd   : > { %p786_p9 = scmp.lt.s32.totalorder %s920_s9, 5  ;;  %s87_s20 = sand.u32 1, %s916_s8  }
   0xe   : > { %p987_p10 = por %p61_p7, %p31_p0  ;;  %p991_p11 = por %p67_p8, %p37_p3 }
   0xf   : > { %s771_s21 = sshll.u32 %s920_s9, 11  ;;  %s741_s22 = sshll.u32 %s87_s20, 7 }
  0x10   : > { %s1348_s18 = scalar_select %p987_p10, 1, 0 }
  0x11   : > { %s1349_s19 = scalar_select %p991_p11, 1, 0 }
  0x12   : > { %s1000_s25 = scalar_lea.hbm %s1343_s0, %s771_s21  ;;  %s91_s26 = scalar_lea.vmem [#allocation2], %s741_s22 }
  0x13   : > { %s99_s27 = sshll.u32 %s91_s26, 4  ;;  %p1004_p12 = pnand %p786_p9, %p977_p5  ;;  %s1008_s27 = int_to_ptr.vmem [resolvable:$true] %s99_s27 }
  0x14   : > { %s1010_s29 = scalar_lea.sflag [#allocation3], %s87_s20  ;;  %s824_s30 = scalar_lea.hbm %s1000_s25, 2048 }
  0x15   : > { %p825_p13 = scmp.ne.s32.totalorder %s1000_s25, %s824_s30  ;;  %p826_p0 = pneg %p1004_p12 }
  0x16   : > { %s829_s4 = scalar_lea.hbm %s1343_s0, 10240  ;;  %p830_p3 = scmp.lt.u32.totalorder %s1000_s25, %s1343_s0 }
  0x17   : > { %p827_p1 = pnand %p826_p0, %p825_p13  ;;  %p831_p4 = scmp.lt.u32.totalorder %s829_s4, %s824_s30 }
  0x18   : > { %p833_p7 = scmp.lt.u32.totalorder %s824_s30, %s1000_s25 }
  0x19   : > { %p828_p2 = pneg %p827_p1  ;;  %p832_p5 = por %p831_p4, %p830_p3 }
  0x1b   : > { %p834_p8 = por %p833_p7, %p832_p5 }
  0x1d   : > { %p835_p9 = pnand %p834_p8, %p828_p2 }
  0x1f   : > { %838 = shalt.err (!%p835_p9)
}
  0x20   : > { %s839_s13 = scalar_lea.vmem %s1008_s27, 2048  ;;  %s922_s14 = smov [#allocation2]  }
  0x21   : > { %p840_p13 = scmp.ne.s32.totalorder %s1008_s27, %s839_s13  ;;  %s844_s16 = sshll.u32 %s922_s14, 4  ;;  %s845_s16 = int_to_ptr.vmem [resolvable:$false] %s844_s16 }
  0x22   : > { %s846_s20 = scalar_lea.vmem %s845_s16, 4096  ;;  %p847_p10 = scmp.lt.s32.totalorder %s1008_s27, %s845_s16 }
  0x23   : > { %p842_p1 = pnand %p840_p13, %p826_p0  ;;  %p848_p3 = scmp.lt.s32.totalorder %s846_s20, %s839_s13 }
  0x25   : > { %p843_p11 = pneg %p842_p1  ;;  %p849_p4 = por %p848_p3, %p847_p10 }
  0x27   : > { %p850_p5 = pnand %p849_p4, %p843_p11 }
  0x29   : > { %853 = shalt.err (!%p850_p5)
}
  0x2a   : > { %s923_s21 = smov 256   ;;  %s924_s22 = smov 16  }
  0x2b   : > { %781 = dma.hbm_to_vmem [thread:$0]  (!%p1004_p12), %s1000_s25, 2048, %s1008_s27, %s1010_s29, %s923_s21, %s923_s21, %s924_s22  }
  0x2c   : > { %p745_p0 = scmp.ge.s32.totalorder %s920_s9, 1  ;;  %p107_p2 = scmp.lt.s32.totalorder %s920_s9, 6 }
  0x2e   : > { %p108_p7 = pnand %p745_p0, %p107_p2 }
  0x2f   : > { %s1041_s23 = sand.u32 (!%p108_p7), 1, %s912_s7  }
  0x30   : > { %111 = sbr.rel (%p108_p7) target bundleno = 203 (0xcb), region = 24  ;;  %s746_s24 = sshll.u32 (!%p108_p7), %s1041_s23, 7 }
  0x31   : > { %s114_s26 = scalar_lea.sflag (!%p108_p7), [#allocation3], %s1041_s23  ;;  %s1047_s30 = scalar_lea.vmem (!%p108_p7), [#allocation2], %s746_s24 }
  0x37   : > { %899 = dma.done.wait (%p981_p6), %s114_s26, 2048  }
  0x38   : > { %901 = vsyncadd (%p981_p6), %s114_s26, 4294965248  ;;  %v1054_v0 = vld [vmem:[%s1047_s30] sm:$0xff]  ;;  %v1057_v1 = vld [vmem:[%s1047_s30 + $0x8] sm:$0xff]  ;;  %s1124_s17 = scalar_lea.vmem [#allocation5], %s746_s24  ;;  %s773_s25 = sshll.u32 %s959_s10, 11 }
  0x39   : > { %v1060_v2 = vld [vmem:[%s1047_s30 + $0x10] sm:$0xff]  ;;  %v170_v3 = vsub.s32 0, %v1054_v0  ;;  %v171_v4 = vsub.s32 0, %v1057_v1  ;;  %v1065_v5 = vld [vmem:[%s1047_s30 + $0x18] sm:$0xff]  ;;  %v1068_v6 = vld [vmem:[%s1047_s30 + $0x20] sm:$0xff]  ;;  %vm154_vm0 = vcmp.lt.s32.totalorder %v1054_v0, 0  ;;  %s1297_s2 = scalar_lea.hbm %s1344_s1, %s773_s25 }
  0x3a   : > { %v172_v7 = vsub.s32 0, %v1060_v2  ;;  %v173_v8 = vsub.s32 0, %v1065_v5  ;;  %v1073_v9 = vld [vmem:[%s1047_s30 + $0x28] sm:$0xff]  ;;  %v174_v12 = vsub.s32 0, %v1068_v6  ;;  %v1093_v19 = vld [vmem:[%s1047_s30 + $0x30] sm:$0xff]  ;;  %vm155_vm1 = vcmp.lt.s32.totalorder %v1057_v1, 0 }
  0x3b   : > { %v1076_v10 = vmin.u32 %v170_v3, %v1054_v0  ;;  %v1079_v11 = vmin.u32 %v171_v4, %v1057_v1  ;;  %v175_v15 = vsub.s32 0, %v1073_v9  ;;  %v176_v31 = vsub.s32 0, %v1093_v19  ;;  %s665_s27 = sshll.u32 %s1124_s17, 4  ;;  %s651_s10 = scalar_lea.sflag [#allocation4], %s1041_s23  ;;  %s1299_s27 = int_to_ptr.vmem [resolvable:$true] %s665_s27 }
  0x3c   : > { %v1083_v13 = vmin.u32 %v172_v7, %v1060_v2  ;;  %v1086_v14 = vmin.u32 %v173_v8, %v1065_v5  ;;  %v1101_v27 = vmin.u32 %v174_v12, %v1068_v6  ;;  %vm156_vm2 = vcmp.lt.s32.totalorder %v1060_v2, 0  ;;  %s854_s3 = scalar_lea.vmem %s1299_s27, 2048  ;;  %p1351_p10 = scmp.ne.s32.totalorder %s1348_s18, 0 }
  0x3d   : > { %v202_v16 = vand.u32 65535, %v1076_v10  ;;  %v218_v17 = vshrl.u32 %v1076_v10, 16  ;;  %v203_v18 = vand.u32 65535, %v1079_v11  ;;  %v219_v20 = vshrl.u32 %v1079_v11, 16  ;;  %p855_p6 = scmp.ne.s32.totalorder %s1299_s27, %s854_s3  ;;  %s925_s4 = smov [#allocation5]  }
  0x3e   : > { %v204_v21 = vand.u32 65535, %v1083_v13  ;;  %v220_v22 = vshrl.u32 %v1083_v13, 16  ;;  %v205_v23 = vand.u32 65535, %v1086_v14  ;;  %v221_v26 = vshrl.u32 %v1086_v14, 16  ;;  %s858_s5 = sshll.u32 %s925_s4, 4  ;;  %s859_s5 = int_to_ptr.vmem [resolvable:$false] %s858_s5 }
  0x3f   : > { %v234_v24 = vmul.u32 18725, %v202_v16  ;;  %v250_v25 = vmul.u32 9362, %v202_v16  ;;  %v1104_v30 = vmin.u32 %v175_v15, %v1073_v9  ;;  %vm157_vm9 = vcmp.lt.s32.totalorder %v1065_v5, 0  ;;  %p856_p11 = pnand %p855_p6, %p1351_p10  ;;  %s860_s11 = scalar_lea.vmem %s859_s5, 4096 }
  0x40   : > { %v266_v28 = vmul.u32 18725, %v218_v17  ;;  %v282_v29 = vmul.u32 9362, %v218_v17  ;;  %v206_v17 = vand.u32 65535, %v1101_v27  ;;  %vm158_vm10 = vcmp.lt.s32.totalorder %v1068_v6, 0  ;;  %p861_p8 = scmp.lt.s32.totalorder %s1299_s27, %s859_s5  ;;  %p862_p9 = scmp.lt.s32.totalorder %s860_s11, %s854_s3 }
  0x41   : > { %v298_v32 = vshrl.u32 %v234_v24, 16  ;;  %v314_v33 = vand.u32 65535, %v250_v25  ;;  %v378_v34 = vshrl.u32 %v250_v25, 16  ;;  %v235_v35 = vmul.u32 18725, %v203_v18  ;;  %p857_p12 = pneg %p856_p11 }
  0x42   : > { %v346_v36 = vand.u32 65535, %v266_v28  ;;  %v410_v37 = vshrl.u32 %v266_v28, 16  ;;  %v251_v38 = vmul.u32 9362, %v203_v18  ;;  %v267_v39 = vmul.u32 18725, %v219_v20  ;;  %p863_p13 = por %p862_p9, %p861_p8 }
  0x43   : > { %v330_v40 = vadd.s32 %v314_v33, %v298_v32  ;;  %v394_v41 = vadd.s32 %v378_v34, %v282_v29  ;;  %v283_v42 = vmul.u32 9362, %v219_v20  ;;  %v299_v43 = vshrl.u32 %v235_v35, 16 }
  0x44   : > { %v315_v44 = vand.u32 65535, %v251_v38  ;;  %v347_v45 = vand.u32 65535, %v267_v39  ;;  %v379_v46 = vshrl.u32 %v251_v38, 16  ;;  %v411_v47 = vshrl.u32 %v267_v39, 16  ;;  %p864_p1 = pnand %p863_p13, %p857_p12 }
  0x45   : > { %v362_v48 = vadd.s32 %v346_v36, %v330_v40  ;;  %v426_v49 = vadd.s32 %v410_v37, %v394_v41  ;;  %v236_v50 = vmul.u32 18725, %v204_v21  ;;  %v252_v51 = vmul.u32 9362, %v204_v21 }
  0x46   : > { %v331_v52 = vadd.s32 %v315_v44, %v299_v43  ;;  %v395_v53 = vadd.s32 %v379_v46, %v283_v42  ;;  %v268_v54 = vmul.u32 18725, %v220_v22  ;;  %v284_v55 = vmul.u32 9362, %v220_v22 }
  0x47   : > { %v442_v56 = vshrl.u32 %v362_v48, 16  ;;  %v300_v57 = vshrl.u32 %v236_v50, 16  ;;  %v316_v58 = vand.u32 65535, %v252_v51  ;;  %v380_v59 = vshrl.u32 %v252_v51, 16 }
  0x48   : > { %v363_v60 = vadd.s32 %v347_v45, %v331_v52  ;;  %v427_v61 = vadd.s32 %v411_v47, %v395_v53  ;;  %v348_v62 = vand.u32 65535, %v268_v54  ;;  %v412_v63 = vshrl.u32 %v268_v54, 16 }
  0x49   : > { %v458_v3 = vadd.s32 %v442_v56, %v426_v49  ;;  %v332_v4 = vadd.s32 %v316_v58, %v300_v57  ;;  %v396_v7 = vadd.s32 %v380_v59, %v284_v55  ;;  %v237_v8 = vmul.u32 18725, %v205_v23 }
  0x4a   : > { %v443_v12 = vshrl.u32 %v363_v60, 16  ;;  %v253_v15 = vmul.u32 9362, %v205_v23  ;;  %v269_v16 = vmul.u32 18725, %v221_v26  ;;  %v222_v37 = vshrl.u32 %v1101_v27, 16 }
  0x4b   : > { %v474_v18 = vsub.s32 %v1076_v10, %v458_v3  ;;  %v364_v20 = vadd.s32 %v348_v62, %v332_v4  ;;  %v428_v21 = vadd.s32 %v412_v63, %v396_v7  ;;  %v285_v22 = vmul.u32 9362, %v221_v26 }
  0x4c   : > { %v459_v24 = vadd.s32 %v443_v12, %v427_v61  ;;  %v301_v25 = vshrl.u32 %v237_v8, 16  ;;  %v317_v28 = vand.u32 65535, %v253_v15  ;;  %v349_v29 = vand.u32 65535, %v269_v16 }
  0x4d   : > { %v490_v32 = vshrl.u32 %v474_v18, 1  ;;  %v444_v33 = vshrl.u32 %v364_v20, 16  ;;  %v381_v34 = vshrl.u32 %v253_v15, 16  ;;  %v413_v35 = vshrl.u32 %v269_v16, 16 }
  0x4e   : > { %v475_v23 = vsub.s32 %v1079_v11, %v459_v24  ;;  %v333_v36 = vadd.s32 %v317_v28, %v301_v25  ;;  %v238_v38 = vmul.u32 18725, %v206_v17  ;;  %v254_v26 = vmul.u32 9362, %v206_v17 }
  0x4f   : > { %v506_v39 = vadd.s32 %v490_v32, %v458_v3  ;;  %v460_v40 = vadd.s32 %v444_v33, %v428_v21  ;;  %v397_v41 = vadd.s32 %v381_v34, %v285_v22  ;;  %v270_v44 = vmul.u32 18725, %v222_v37 }
  0x50   : > { %v491_v42 = vshrl.u32 %v475_v23, 1  ;;  %v365_v43 = vadd.s32 %v349_v29, %v333_v36  ;;  %v286_v45 = vmul.u32 9362, %v222_v37  ;;  %v302_v49 = vshrl.u32 %v238_v38, 16 }
  0x51   : > { %v522_v46 = vshrl.u32 %v506_v39, 2  ;;  %v476_v47 = vsub.s32 %v1083_v13, %v460_v40  ;;  %v429_v48 = vadd.s32 %v413_v35, %v397_v41  ;;  %v318_v52 = vand.u32 65535, %v254_v26 }
  0x52   : > { %v507_v50 = vadd.s32 %v491_v42, %v459_v24  ;;  %v445_v51 = vshrl.u32 %v365_v43, 16  ;;  %v350_v53 = vand.u32 65535, %v270_v44  ;;  %v382_v56 = vshrl.u32 %v254_v26, 16 }
  0x53   : > { %v538_v54 = vmul.u32 7, %v522_v46  ;;  %v492_v55 = vshrl.u32 %v476_v47, 1  ;;  %v414_v57 = vshrl.u32 %v270_v44, 16  ;;  %v334_v60 = vadd.s32 %v318_v52, %v302_v49 }
  0x54   : > { %v523_v58 = vshrl.u32 %v507_v50, 2  ;;  %v461_v59 = vadd.s32 %v445_v51, %v429_v48  ;;  %v207_v61 = vand.u32 65535, %v1104_v30  ;;  %v398_v3 = vadd.s32 %v382_v56, %v286_v45 }
  0x55   : > { %v554_v62 = vsub.s32 %v1076_v10, %v538_v54  ;;  %v508_v63 = vadd.s32 %v492_v55, %v460_v40  ;;  %v223_v4 = vshrl.u32 %v1104_v30, 16  ;;  %v366_v12 = vadd.s32 %v350_v53, %v334_v60  ;;  %v1132_v40 = vld [vmem:[%s1047_s30 + $0x38] sm:$0xff] }
  0x56   : > { %v539_v7 = vmul.u32 7, %v523_v58  ;;  %v477_v8 = vsub.s32 %v1086_v14, %v461_v59  ;;  %v239_v15 = vmul.u32 18725, %v207_v61  ;;  %v430_v18 = vadd.s32 %v414_v57, %v398_v3 }
  0x57   : > { %vm570_vm3 = vcmp.gt.s32.totalorder %v554_v62, 0  ;;  %v602_v16 = vsub.s32 7, %v554_v62  ;;  %v524_v17 = vshrl.u32 %v508_v63, 2  ;;  %v446_v21 = vshrl.u32 %v366_v12, 16 }
  0x58   : > { %vm586_vm4 = vmand %vm154_vm0, %vm570_vm3  ;;  %v555_v20 = vsub.s32 %v1079_v11, %v539_v7  ;;  %v493_v10 = vshrl.u32 %v477_v8, 1  ;;  %v255_v22 = vmul.u32 9362, %v207_v61  ;;  %v271_v28 = vmul.u32 18725, %v223_v4 }
  0x59   : > { %v618_v24 = vsel %vm586_vm4, %v602_v16, %v554_v62  ;;  %v540_v25 = vmul.u32 7, %v524_v17  ;;  %v303_v29 = vshrl.u32 %v239_v15, 16  ;;  %v462_v33 = vadd.s32 %v446_v21, %v430_v18 }
  0x5a   : > { %634 = vst [vmem:[%s1124_s17] sm:$0xff] %v618_v24  ;;  %vm571_vm5 = vcmp.gt.s32.totalorder %v555_v20, 0  ;;  %v603_v32 = vsub.s32 7, %v555_v20  ;;  %v509_v0 = vadd.s32 %v493_v10, %v461_v59  ;;  %v287_v34 = vmul.u32 9362, %v223_v4  ;;  %v1160_v24 = vld [vmem:[%s1047_s30 + $0x40] sm:$0xff] }
  0x5b   : > { %vm587_vm6 = vmand %vm155_vm1, %vm571_vm5  ;;  %v556_v11 = vsub.s32 %v1083_v13, %v540_v25  ;;  %v319_v35 = vand.u32 65535, %v255_v22  ;;  %v351_v23 = vand.u32 65535, %v271_v28  ;;  %v478_v38 = vsub.s32 %v1101_v27, %v462_v33 }
  0x5c   : > { %v619_v36 = vsel %vm587_vm6, %v603_v32, %v555_v20  ;;  %v525_v37 = vshrl.u32 %v509_v0, 2  ;;  %v383_v39 = vshrl.u32 %v255_v22, 16  ;;  %v415_v42 = vshrl.u32 %v271_v28, 16  ;;  %v1165_v32 = vld [vmem:[%s1047_s30 + $0x48] sm:$0xff] }
  0x5d   : > { %635 = vst [vmem:[%s1124_s17 + $0x8] sm:$0xff] %v619_v36  ;;  %vm572_vm7 = vcmp.gt.s32.totalorder %v556_v11, 0  ;;  %v604_v41 = vsub.s32 7, %v556_v11  ;;  %v335_v26 = vadd.s32 %v319_v35, %v303_v29  ;;  %v494_v13 = vshrl.u32 %v478_v38, 1  ;;  %v1170_v38 = vld [vmem:[%s1047_s30 + $0x50] sm:$0xff] }
  0x5e   : > { %vm588_vm8 = vmand %vm156_vm2, %vm572_vm7  ;;  %v541_v1 = vmul.u32 7, %v525_v37  ;;  %v399_v43 = vadd.s32 %v383_v39, %v287_v34  ;;  %v1140_v44 = vmin.u32 %v176_v31, %v1093_v19  ;;  %v177_v47 = vsub.s32 0, %v1132_v40 }
  0x5f   : > { %v620_v45 = vsel %vm588_vm8, %v604_v41, %v556_v11  ;;  %v367_v46 = vadd.s32 %v351_v23, %v335_v26  ;;  %v510_v49 = vadd.s32 %v494_v13, %v462_v33  ;;  %v178_v37 = vsub.s32 0, %v1160_v24 }
  0x60   : > { %636 = vst [vmem:[%s1124_s17 + $0x10] sm:$0xff] %v620_v45  ;;  %v557_v48 = vsub.s32 %v1086_v14, %v541_v1  ;;  %v431_v2 = vadd.s32 %v415_v42, %v399_v43  ;;  %v208_v50 = vand.u32 65535, %v1140_v44  ;;  %v224_v31 = vshrl.u32 %v1140_v44, 16 }
  0x61   : > { %v447_v51 = vshrl.u32 %v367_v46, 16  ;;  %v1150_v52 = vmin.u32 %v177_v47, %v1132_v40  ;;  %v526_v54 = vshrl.u32 %v510_v49, 2  ;;  %v179_v41 = vsub.s32 0, %v1165_v32 }
  0x62   : > { %vm573_vm11 = vcmp.gt.s32.totalorder %v557_v48, 0  ;;  %v605_v53 = vsub.s32 7, %v557_v48  ;;  %v240_v55 = vmul.u32 18725, %v208_v50  ;;  %v256_v56 = vmul.u32 9362, %v208_v50 }
  0x63   : > { %vm589_vm12 = vmand %vm157_vm9, %vm573_vm11  ;;  %v463_v14 = vadd.s32 %v447_v51, %v431_v2  ;;  %v272_v57 = vmul.u32 18725, %v224_v31  ;;  %v209_v58 = vand.u32 65535, %v1150_v52  ;;  %v542_v60 = vmul.u32 7, %v526_v54 }
  0x64   : > { %v621_v59 = vsel %vm589_vm12, %v605_v53, %v557_v48  ;;  %v288_v61 = vmul.u32 9362, %v224_v31  ;;  %v304_v62 = vshrl.u32 %v240_v55, 16  ;;  %v320_v3 = vand.u32 65535, %v256_v56 }
  0x65   : > { %637 = vst [vmem:[%s1124_s17 + $0x18] sm:$0xff] %v621_v59  ;;  %v479_v63 = vsub.s32 %v1104_v30, %v463_v14  ;;  %v352_v4 = vand.u32 65535, %v272_v57  ;;  %v384_v7 = vshrl.u32 %v256_v56, 16  ;;  %v558_v8 = vsub.s32 %v1101_v27, %v542_v60 }
  0x66   : > { %v416_v5 = vshrl.u32 %v272_v57, 16  ;;  %v225_v12 = vshrl.u32 %v1150_v52, 16  ;;  %v241_v15 = vmul.u32 18725, %v209_v58  ;;  %v336_v17 = vadd.s32 %v320_v3, %v304_v62 }
  0x67   : > { %v495_v16 = vshrl.u32 %v479_v63, 1  ;;  %v400_v18 = vadd.s32 %v384_v7, %v288_v61  ;;  %v257_v20 = vmul.u32 9362, %v209_v58  ;;  %vm574_vm13 = vcmp.gt.s32.totalorder %v558_v8, 0 }
  0x68   : > { %v606_v10 = vsub.s32 7, %v558_v8  ;;  %v273_v21 = vmul.u32 18725, %v225_v12  ;;  %v289_v22 = vmul.u32 9362, %v225_v12  ;;  %vm590_vm14 = vmand %vm158_vm10, %vm574_vm13  ;;  %v368_v25 = vadd.s32 %v352_v4, %v336_v17 }
  0x69   : > { %v511_v27 = vadd.s32 %v495_v16, %v463_v14  ;;  %v432_v28 = vadd.s32 %v416_v5, %v400_v18  ;;  %v305_v29 = vshrl.u32 %v241_v15, 16  ;;  %v321_v33 = vand.u32 65535, %v257_v20 }
  0x6a   : > { %v622_v0 = vsel %vm590_vm14, %v606_v10, %v558_v8  ;;  %v353_v11 = vand.u32 65535, %v273_v21  ;;  %v385_v34 = vshrl.u32 %v257_v20, 16  ;;  %v448_v23 = vshrl.u32 %v368_v25, 16 }
  0x6b   : > { %638 = vst [vmem:[%s1124_s17 + $0x20] sm:$0xff] %v622_v0  ;;  %v527_v35 = vshrl.u32 %v511_v27, 2  ;;  %v417_v36 = vshrl.u32 %v273_v21, 16  ;;  %v337_v6 = vadd.s32 %v321_v33, %v305_v29  ;;  %vm159_vm15 = vcmp.lt.s32.totalorder %v1073_v9, 0 }
  0x6c   : > { %v401_v39 = vadd.s32 %v385_v34, %v289_v22  ;;  %v464_v42 = vadd.s32 %v448_v23, %v432_v28  ;;  %v1175_v1 = vmin.u32 %v178_v37, %v1160_v24  ;;  %v1178_v45 = vmin.u32 %v179_v41, %v1165_v32 }
  0x6d   : > { %v543_v26 = vmul.u32 7, %v527_v35  ;;  %v369_v13 = vadd.s32 %v353_v11, %v337_v6  ;;  %v180_v46 = vsub.s32 0, %v1170_v38  ;;  %vm160_vm1 = vcmp.lt.s32.totalorder %v1093_v19, 0 }
  0x6e   : > { %v433_v43 = vadd.s32 %v417_v36, %v401_v39  ;;  %v480_v48 = vsub.s32 %v1140_v44, %v464_v42  ;;  %v210_v49 = vand.u32 65535, %v1175_v1  ;;  %v226_v2 = vshrl.u32 %v1175_v1, 16 }
  0x6f   : > { %v559_v47 = vsub.s32 %v1104_v30, %v543_v26  ;;  %v449_v50 = vshrl.u32 %v369_v13, 16  ;;  %v211_v51 = vand.u32 65535, %v1178_v45  ;;  %v227_v31 = vshrl.u32 %v1178_v45, 16 }
  0x70   : > { %v1188_v53 = vmin.u32 %v180_v46, %v1170_v38  ;;  %v496_v30 = vshrl.u32 %v480_v48, 1  ;;  %v242_v55 = vmul.u32 18725, %v210_v49  ;;  %v258_v56 = vmul.u32 9362, %v210_v49 }
  0x71   : > { %vm575_vm0 = vcmp.gt.s32.totalorder %v559_v47, 0  ;;  %v607_v54 = vsub.s32 7, %v559_v47  ;;  %v465_v14 = vadd.s32 %v449_v50, %v433_v43  ;;  %v274_v57 = vmul.u32 18725, %v226_v2 }
  0x72   : > { %vm591_vm2 = vmand %vm159_vm15, %vm575_vm0  ;;  %v212_v58 = vand.u32 65535, %v1188_v53  ;;  %v512_v60 = vadd.s32 %v496_v30, %v464_v42  ;;  %v290_v61 = vmul.u32 9362, %v226_v2  ;;  %v306_v62 = vshrl.u32 %v242_v55, 16 }
  0x73   : > { %v623_v59 = vsel %vm591_vm2, %v607_v54, %v559_v47  ;;  %v481_v63 = vsub.s32 %v1150_v52, %v465_v14  ;;  %v322_v3 = vand.u32 65535, %v258_v56  ;;  %v354_v4 = vand.u32 65535, %v274_v57 }
  0x74   : > { %639 = vst [vmem:[%s1124_s17 + $0x28] sm:$0xff] %v623_v59  ;;  %v386_v7 = vshrl.u32 %v258_v56, 16  ;;  %v528_v8 = vshrl.u32 %v512_v60, 2  ;;  %v418_v5 = vshrl.u32 %v274_v57, 16  ;;  %v243_v12 = vmul.u32 18725, %v211_v51 }
  0x75   : > { %v259_v9 = vmul.u32 9362, %v211_v51  ;;  %vm161_vm3 = vcmp.lt.s32.totalorder %v1132_v40, 0  ;;  %v497_v15 = vshrl.u32 %v481_v63, 1  ;;  %v338_v16 = vadd.s32 %v322_v3, %v306_v62 }
  0x76   : > { %v402_v17 = vadd.s32 %v386_v7, %v290_v61  ;;  %v275_v18 = vmul.u32 18725, %v227_v31  ;;  %v544_v20 = vmul.u32 7, %v528_v8  ;;  %v307_v21 = vshrl.u32 %v243_v12, 16  ;;  %v1215_v61 = vld [vmem:[%s1047_s30 + $0x68] sm:$0xff] }
  0x77   : > { %v291_v10 = vmul.u32 9362, %v227_v31  ;;  %v323_v22 = vand.u32 65535, %v259_v9  ;;  %v513_v27 = vadd.s32 %v497_v15, %v465_v14  ;;  %v370_v25 = vadd.s32 %v354_v4, %v338_v16  ;;  %v1205_v31 = vld [vmem:[%s1047_s30 + $0x58] sm:$0xff] }
  0x78   : > { %v434_v28 = vadd.s32 %v418_v5, %v402_v17  ;;  %v355_v29 = vand.u32 65535, %v275_v18  ;;  %v560_v0 = vsub.s32 %v1140_v44, %v544_v20  ;;  %v387_v11 = vshrl.u32 %v259_v9, 16 }
  0x79   : > { %v339_v33 = vadd.s32 %v323_v22, %v307_v21  ;;  %v419_v34 = vshrl.u32 %v275_v18, 16  ;;  %v529_v35 = vshrl.u32 %v513_v27, 2  ;;  %v450_v23 = vshrl.u32 %v370_v25, 16 }
  0x7a   : > { %v228_v36 = vshrl.u32 %v1188_v53, 16  ;;  %v244_v37 = vmul.u32 18725, %v212_v58  ;;  %vm576_vm4 = vcmp.gt.s32.totalorder %v560_v0, 0  ;;  %v608_v6 = vsub.s32 7, %v560_v0 }
  0x7b   : > { %v371_v39 = vadd.s32 %v355_v29, %v339_v33  ;;  %v403_v41 = vadd.s32 %v387_v11, %v291_v10  ;;  %vm592_vm5 = vmand %vm160_vm1, %vm576_vm4  ;;  %v545_v26 = vmul.u32 7, %v529_v35  ;;  %v466_v42 = vadd.s32 %v450_v23, %v434_v28 }
  0x7c   : > { %v260_v44 = vmul.u32 9362, %v212_v58  ;;  %v308_v13 = vshrl.u32 %v244_v37, 16  ;;  %v624_v43 = vsel %vm592_vm5, %v608_v6, %v560_v0  ;;  %v276_v48 = vmul.u32 18725, %v228_v36  ;;  %v1208_v58 = vld [vmem:[%s1047_s30 + $0x60] sm:$0xff] }
  0x7d   : > { %v435_v46 = vadd.s32 %v419_v34, %v403_v41  ;;  %v451_v47 = vshrl.u32 %v371_v39, 16  ;;  %640 = vst [vmem:[%s1124_s17 + $0x30] sm:$0xff] %v624_v43  ;;  %v561_v49 = vsub.s32 %v1150_v52, %v545_v26  ;;  %v482_v2 = vsub.s32 %v1175_v1, %v466_v42 }
  0x7e   : > { %v292_v50 = vmul.u32 9362, %v228_v36  ;;  %v324_v51 = vand.u32 65535, %v260_v44  ;;  %v356_v54 = vand.u32 65535, %v276_v48  ;;  %v388_v30 = vshrl.u32 %v260_v44, 16 }
  0x7f   : > { %v467_v19 = vadd.s32 %v451_v47, %v435_v46  ;;  %v420_v55 = vshrl.u32 %v276_v48, 16  ;;  %vm577_vm6 = vcmp.gt.s32.totalorder %v561_v49, 0  ;;  %v609_v14 = vsub.s32 7, %v561_v49 }
  0x80   : > { %v498_v56 = vshrl.u32 %v482_v2, 1  ;;  %v340_v57 = vadd.s32 %v324_v51, %v308_v13  ;;  %vm593_vm7 = vmand %vm161_vm3, %vm577_vm6  ;;  %v404_v59 = vadd.s32 %v388_v30, %v292_v50  ;;  %v181_v60 = vsub.s32 0, %v1205_v31 }
  0x81   : > { %v483_v52 = vsub.s32 %v1178_v45, %v467_v19  ;;  %v625_v62 = vsel %vm593_vm7, %v609_v14, %v561_v49  ;;  %v182_v5 = vsub.s32 0, %v1208_v58  ;;  %vm162_vm8 = vcmp.lt.s32.totalorder %v1160_v24, 0 }
  0x82   : > { %v514_v63 = vadd.s32 %v498_v56, %v466_v42  ;;  %v372_v3 = vadd.s32 %v356_v54, %v340_v57  ;;  %641 = vst [vmem:[%s1124_s17 + $0x38] sm:$0xff] %v625_v62  ;;  %v436_v7 = vadd.s32 %v420_v55, %v404_v59  ;;  %v1219_v8 = vmin.u32 %v181_v60, %v1205_v31 }
  0x83   : > { %v499_v4 = vshrl.u32 %v483_v52, 1  ;;  %v183_v9 = vsub.s32 0, %v1215_v61  ;;  %v1227_v18 = vmin.u32 %v182_v5, %v1208_v58  ;;  %vm163_vm9 = vcmp.lt.s32.totalorder %v1165_v32, 0 }
  0x84   : > { %v530_v40 = vshrl.u32 %v514_v63, 2  ;;  %v452_v12 = vshrl.u32 %v372_v3, 16  ;;  %v213_v16 = vand.u32 65535, %v1219_v8  ;;  %v229_v17 = vshrl.u32 %v1219_v8, 16 }
  0x85   : > { %v515_v15 = vadd.s32 %v499_v4, %v467_v19  ;;  %v1231_v21 = vmin.u32 %v183_v9, %v1215_v61  ;;  %v214_v28 = vand.u32 65535, %v1227_v18  ;;  %vm164_vm11 = vcmp.lt.s32.totalorder %v1170_v38, 0  ;;  %v1250_v9 = vld [vmem:[%s1047_s30 + $0x70] sm:$0xff] }
  0x86   : > { %v546_v20 = vmul.u32 7, %v530_v40  ;;  %v468_v10 = vadd.s32 %v452_v12, %v436_v7  ;;  %v245_v27 = vmul.u32 18725, %v213_v16  ;;  %v230_v43 = vshrl.u32 %v1227_v18, 16 }
  0x87   : > { %v531_v22 = vshrl.u32 %v515_v15, 2  ;;  %v261_v25 = vmul.u32 9362, %v213_v16  ;;  %v277_v33 = vmul.u32 18725, %v229_v17  ;;  %v215_v30 = vand.u32 65535, %v1231_v21 }
  0x88   : > { %v562_v29 = vsub.s32 %v1175_v1, %v546_v20  ;;  %v484_v0 = vsub.s32 %v1188_v53, %v468_v10  ;;  %v293_v11 = vmul.u32 9362, %v229_v17  ;;  %v309_v35 = vshrl.u32 %v245_v27, 16  ;;  %v1255_v27 = vld [vmem:[%s1047_s30 + $0x78] sm:$0xff] }
  0x89   : > { %v547_v34 = vmul.u32 7, %v531_v22  ;;  %v325_v23 = vand.u32 65535, %v261_v25  ;;  %v389_v36 = vshrl.u32 %v261_v25, 16  ;;  %v357_v39 = vand.u32 65535, %v277_v33 }
  0x8a   : > { %vm578_vm10 = vcmp.gt.s32.totalorder %v562_v29, 0  ;;  %v610_v37 = vsub.s32 7, %v562_v29  ;;  %v500_v6 = vshrl.u32 %v484_v0, 1  ;;  %v421_v42 = vshrl.u32 %v277_v33, 16 }
  0x8b   : > { %vm594_vm12 = vmand %vm162_vm8, %vm578_vm10  ;;  %v563_v1 = vsub.s32 %v1178_v45, %v547_v34  ;;  %v341_v41 = vadd.s32 %v325_v23, %v309_v35  ;;  %v405_v26 = vadd.s32 %v389_v36, %v293_v11  ;;  %v246_v46 = vmul.u32 18725, %v214_v28 }
  0x8c   : > { %v626_v44 = vsel %vm594_vm12, %v610_v37, %v562_v29  ;;  %v516_v13 = vadd.s32 %v500_v6, %v468_v10  ;;  %v262_v2 = vmul.u32 9362, %v214_v28  ;;  %v278_v45 = vmul.u32 18725, %v230_v43 }
  0x8d   : > { %642 = vst [vmem:[%s1124_s17 + $0x40] sm:$0xff] %v626_v44  ;;  %vm579_vm13 = vcmp.gt.s32.totalorder %v563_v1, 0  ;;  %v611_v47 = vsub.s32 7, %v563_v1  ;;  %v373_v48 = vadd.s32 %v357_v39, %v341_v41  ;;  %v437_v49 = vadd.s32 %v421_v42, %v405_v26 }
  0x8e   : > { %vm595_vm14 = vmand %vm163_vm9, %vm579_vm13  ;;  %v532_v24 = vshrl.u32 %v516_v13, 2  ;;  %v310_v50 = vshrl.u32 %v246_v46, 16  ;;  %v294_v54 = vmul.u32 9362, %v230_v43  ;;  %v326_v14 = vand.u32 65535, %v262_v2 }
  0x8f   : > { %v627_v51 = vsel %vm595_vm14, %v611_v47, %v563_v1  ;;  %v453_v19 = vshrl.u32 %v373_v48, 16  ;;  %v358_v56 = vand.u32 65535, %v278_v45  ;;  %v390_v57 = vshrl.u32 %v262_v2, 16 }
  0x90   : > { %643 = vst [vmem:[%s1124_s17 + $0x48] sm:$0xff] %v627_v51  ;;  %v548_v55 = vmul.u32 7, %v532_v24  ;;  %v422_v59 = vshrl.u32 %v278_v45, 16  ;;  %v231_v32 = vshrl.u32 %v1231_v21, 16  ;;  %v247_v60 = vmul.u32 18725, %v215_v30 }
  0x91   : > { %v469_v52 = vadd.s32 %v453_v19, %v437_v49  ;;  %v342_v63 = vadd.s32 %v326_v14, %v310_v50  ;;  %v406_v3 = vadd.s32 %v390_v57, %v294_v54  ;;  %v263_v4 = vmul.u32 9362, %v215_v30 }
  0x92   : > { %v564_v62 = vsub.s32 %v1188_v53, %v548_v55  ;;  %v279_v5 = vmul.u32 18725, %v231_v32  ;;  %v295_v40 = vmul.u32 9362, %v231_v32  ;;  %v311_v12 = vshrl.u32 %v247_v60, 16 }
  0x93   : > { %v485_v7 = vsub.s32 %v1219_v8, %v469_v52  ;;  %v374_v16 = vadd.s32 %v358_v56, %v342_v63  ;;  %v438_v17 = vadd.s32 %v422_v59, %v406_v3  ;;  %v327_v20 = vand.u32 65535, %v263_v4 }
  0x94   : > { %vm580_vm15 = vcmp.gt.s32.totalorder %v564_v62, 0  ;;  %v612_v15 = vsub.s32 7, %v564_v62  ;;  %v359_v10 = vand.u32 65535, %v279_v5  ;;  %v391_v22 = vshrl.u32 %v263_v4, 16 }
  0x95   : > { %vm596_vm0 = vmand %vm164_vm11, %vm580_vm15  ;;  %v501_v53 = vshrl.u32 %v485_v7, 1  ;;  %v454_v28 = vshrl.u32 %v374_v16, 16  ;;  %v423_v29 = vshrl.u32 %v279_v5, 16  ;;  %v184_v0 = vsub.s32 0, %v1250_v9 }
  0x96   : > { %v628_v25 = vsel %vm596_vm0, %v612_v15, %v564_v62  ;;  %v343_v11 = vadd.s32 %v327_v20, %v311_v12  ;;  %v407_v34 = vadd.s32 %v391_v22, %v295_v40  ;;  %v185_v38 = vsub.s32 0, %v1255_v27 }
  0x97   : > { %644 = vst [vmem:[%s1124_s17 + $0x50] sm:$0xff] %v628_v25  ;;  %v517_v33 = vadd.s32 %v501_v53, %v469_v52  ;;  %v470_v35 = vadd.s32 %v454_v28, %v438_v17  ;;  %v1260_v23 = vmin.u32 %v184_v0, %v1250_v9  ;;  %vm165_vm1 = vcmp.lt.s32.totalorder %v1205_v31, 0 }
  0x98   : > { %v375_v37 = vadd.s32 %v359_v10, %v343_v11  ;;  %v439_v6 = vadd.s32 %v423_v29, %v407_v34  ;;  %v1267_v26 = vmin.u32 %v185_v38, %v1255_v27  ;;  %vm166_vm2 = vcmp.lt.s32.totalorder %v1208_v58, 0 }
  0x99   : > { %v533_v36 = vshrl.u32 %v517_v33, 2  ;;  %v486_v39 = vsub.s32 %v1227_v18, %v470_v35  ;;  %v216_v1 = vand.u32 65535, %v1260_v23  ;;  %v232_v41 = vshrl.u32 %v1260_v23, 16 }
  0x9a   : > { %v455_v44 = vshrl.u32 %v375_v37, 16  ;;  %v217_v47 = vand.u32 65535, %v1267_v26  ;;  %v233_v32 = vshrl.u32 %v1267_v26, 16  ;;  %vm167_vm7 = vcmp.lt.s32.totalorder %v1215_v61, 0 }
  0x9b   : > { %v549_v42 = vmul.u32 7, %v533_v36  ;;  %v502_v13 = vshrl.u32 %v486_v39, 1  ;;  %v248_v43 = vmul.u32 18725, %v216_v1  ;;  %vm168_vm10 = vcmp.lt.s32.totalorder %v1250_v9, 0 }
  0x9c   : > { %v264_v46 = vmul.u32 9362, %v216_v1  ;;  %v471_v49 = vadd.s32 %v455_v44, %v439_v6  ;;  %v280_v24 = vmul.u32 18725, %v232_v41  ;;  %vm169_vm13 = vcmp.lt.s32.totalorder %v1255_v27, 0 }
  0x9d   : > { %v565_v48 = vsub.s32 %v1219_v8, %v549_v42  ;;  %v296_v2 = vmul.u32 9362, %v232_v41  ;;  %v518_v45 = vadd.s32 %v502_v13, %v470_v35  ;;  %v312_v50 = vshrl.u32 %v248_v43, 16 }
  0x9e   : > { %v328_v51 = vand.u32 65535, %v264_v46  ;;  %v392_v19 = vshrl.u32 %v264_v46, 16  ;;  %v487_v30 = vsub.s32 %v1231_v21, %v471_v49  ;;  %v360_v55 = vand.u32 65535, %v280_v24 }
  0x9f   : > { %vm581_vm3 = vcmp.gt.s32.totalorder %v565_v48, 0  ;;  %v613_v54 = vsub.s32 7, %v565_v48  ;;  %v534_v14 = vshrl.u32 %v518_v45, 2  ;;  %v424_v8 = vshrl.u32 %v280_v24, 16 }
  0xa0   : > { %vm597_vm4 = vmand %vm165_vm1, %vm581_vm3  ;;  %v344_v56 = vadd.s32 %v328_v51, %v312_v50  ;;  %v408_v57 = vadd.s32 %v392_v19, %v296_v2  ;;  %v503_v59 = vshrl.u32 %v487_v30, 1  ;;  %v249_v60 = vmul.u32 18725, %v217_v47 }
  0xa1   : > { %v629_v52 = vsel %vm597_vm4, %v613_v54, %v565_v48  ;;  %v550_v62 = vmul.u32 7, %v534_v14  ;;  %v265_v4 = vmul.u32 9362, %v217_v47 }
  0xa2   : > { %645 = vst [vmem:[%s1124_s17 + $0x58] sm:$0xff] %v629_v52  ;;  %v376_v63 = vadd.s32 %v360_v55, %v344_v56  ;;  %v440_v3 = vadd.s32 %v424_v8, %v408_v57  ;;  %v519_v7 = vadd.s32 %v503_v59, %v471_v49  ;;  %v281_v5 = vmul.u32 18725, %v233_v32 }
  0xa3   : > { %v297_v40 = vmul.u32 9362, %v233_v32  ;;  %v313_v12 = vshrl.u32 %v249_v60, 16  ;;  %v566_v31 = vsub.s32 %v1227_v18, %v550_v62  ;;  %v329_v16 = vand.u32 65535, %v265_v4 }
  0xa4   : > { %v456_v15 = vshrl.u32 %v376_v63, 16  ;;  %v393_v17 = vshrl.u32 %v265_v4, 16  ;;  %v535_v53 = vshrl.u32 %v519_v7, 2  ;;  %v361_v20 = vand.u32 65535, %v281_v5 }
  0xa5   : > { %v425_v10 = vshrl.u32 %v281_v5, 16  ;;  %vm582_vm5 = vcmp.gt.s32.totalorder %v566_v31, 0  ;;  %v614_v22 = vsub.s32 7, %v566_v31  ;;  %v345_v28 = vadd.s32 %v329_v16, %v313_v12 }
  0xa6   : > { %v472_v25 = vadd.s32 %v456_v15, %v440_v3  ;;  %vm598_vm6 = vmand %vm166_vm2, %vm582_vm5  ;;  %v551_v29 = vmul.u32 7, %v535_v53  ;;  %v409_v0 = vadd.s32 %v393_v17, %v297_v40 }
  0xa7   : > { %v630_v33 = vsel %vm598_vm6, %v614_v22, %v566_v31  ;;  %v377_v11 = vadd.s32 %v361_v20, %v345_v28 }
  0xa8   : > { %v488_v18 = vsub.s32 %v1260_v23, %v472_v25  ;;  %646 = vst [vmem:[%s1124_s17 + $0x60] sm:$0xff] %v630_v33  ;;  %v567_v34 = vsub.s32 %v1231_v21, %v551_v29  ;;  %v441_v35 = vadd.s32 %v425_v10, %v409_v0 }
  0xa9   : > { %v457_v36 = vshrl.u32 %v377_v11, 16 }
  0xaa   : > { %v504_v38 = vshrl.u32 %v488_v18, 1  ;;  %vm583_vm8 = vcmp.gt.s32.totalorder %v567_v34, 0  ;;  %v615_v37 = vsub.s32 7, %v567_v34 }
  0xab   : > { %vm599_vm9 = vmand %vm167_vm7, %vm583_vm8  ;;  %v473_v6 = vadd.s32 %v457_v36, %v441_v35 }
  0xac   : > { %v520_v58 = vadd.s32 %v504_v38, %v472_v25  ;;  %v631_v39 = vsel %vm599_vm9, %v615_v37, %v567_v34 }
  0xad   : > { %647 = vst [vmem:[%s1124_s17 + $0x68] sm:$0xff] %v631_v39  ;;  %v489_v41 = vsub.s32 %v1267_v26, %v473_v6 }
  0xae   : > { %v536_v1 = vshrl.u32 %v520_v58, 2 }
  0xaf   : > { %v505_v61 = vshrl.u32 %v489_v41, 1 }
  0xb0   : > { %v552_v42 = vmul.u32 7, %v536_v1 }
  0xb1   : > { %v521_v44 = vadd.s32 %v505_v61, %v473_v6 }
  0xb2   : > { %v568_v21 = vsub.s32 %v1260_v23, %v552_v42 }
  0xb3   : > { %v537_v43 = vshrl.u32 %v521_v44, 2 }
  0xb4   : > { %vm584_vm11 = vcmp.gt.s32.totalorder %v568_v21, 0  ;;  %v616_v13 = vsub.s32 7, %v568_v21 }
  0xb5   : > { %vm600_vm12 = vmand %vm168_vm10, %vm584_vm11  ;;  %v553_v47 = vmul.u32 7, %v537_v43 }
  0xb6   : > { %v632_v46 = vsel %vm600_vm12, %v616_v13, %v568_v21 }
  0xb7   : > { %648 = vst [vmem:[%s1124_s17 + $0x70] sm:$0xff] %v632_v46  ;;  %v569_v48 = vsub.s32 %v1267_v26, %v553_v47 }
  0xb9   : > { %vm585_vm14 = vcmp.gt.s32.totalorder %v569_v48, 0  ;;  %v617_v9 = vsub.s32 7, %v569_v48 }
  0xba   : > { %vm601_vm15 = vmand %vm169_vm13, %vm585_vm14 }
  0xbb   : > { %v633_v23 = vsel %vm601_vm15, %v617_v9, %v569_v48 }
  0xbc   : > { %649 = vst [vmem:[%s1124_s17 + $0x78] sm:$0xff] %v633_v23 }
  0xbd   : > { %867 = shalt.err (!%p864_p1)
}
  0xbe   : > { %s868_s13 = scalar_lea.hbm %s1297_s2, 2048  ;;  %s872_s20 = scalar_lea.hbm %s1344_s1, 10240 }
  0xbf   : > { %p869_p3 = scmp.ne.s32.totalorder %s1297_s2, %s868_s13  ;;  %p873_p0 = scmp.lt.u32.totalorder %s1297_s2, %s1344_s1 }
  0xc0   : > { %p874_p2 = scmp.lt.u32.totalorder %s872_s20, %s868_s13  ;;  %p876_p6 = scmp.lt.u32.totalorder %s868_s13, %s1297_s2 }
  0xc1   : > { %p870_p4 = pnand %p869_p3, %p1351_p10 }
  0xc2   : > { %p875_p7 = por %p874_p2, %p873_p0 }
  0xc3   : > { %p871_p5 = pneg %p870_p4 }
  0xc4   : > { %p877_p11 = por %p876_p6, %p875_p7 }
  0xc6   : > { %p878_p12 = pnand %p877_p11, %p871_p5 }
  0xc8   : > { %881 = shalt.err (!%p878_p12)
}
  0xc9   : > { %s926_s24 = smov 256   ;;  %s927_s26 = smov 16  }
  0xca   : > { %776 = dma.vmem_to_hbm [thread:$0]  (%p1351_p10), %s1299_s27, 2048, %s1297_s2, %s651_s10, %s926_s24, %s926_s24, %s927_s26  }
  0xcb PF: > { %p787_p8 = scmp.ge.s32.totalorder %s920_s9, 2  ;;  %s680_s30 = sand.u32 1, %s908_s6  }
  0xcc   : > { %p1352_p9 = scmp.ne.s32.totalorder %s1349_s19, 0  ;;  %s681_s17 = scalar_lea.sflag [#allocation4], %s680_s30 }
  0xce   : > { %p783_p13 = pnand %p787_p8, %p1352_p9 }
  0xd0   : > { %903 = dma.done.wait (!%p783_p13), %s681_s17, 2048  }
  0xd1   : > { %905 = vsyncadd (!%p783_p13), %s681_s17, 4294965248  ;;  %p14_p1 = scmp.ge.s32.totalorder %s963_s12, 7   ;;  %s1353_s6 = smov %s912_s7 }
  0xd2   : > { %s1354_s7 = smov %s916_s8  ;;  %s1355_s8 = smov %s975_s15 }
  0xd3   : > { %s1356_s9 = smov %s963_s12  ;;  %16 = sbr.rel (!%p14_p1) target bundleno = 5 (0x5), region = 69 }
  0xda   :  { %686 = vsyncpa [#allocation3], 1 }
  0xdb   :  { %688 = vsyncpa [#allocation3 + $0x1], 1 }
  0xdc   :  { %689 = vsyncpa [#allocation4], 1 }
  0xdd   :  { %691 = vsyncpa [#allocation4 + $0x1], 1 }

</bundles_post_ra>
